<compile_context>
chip_gen: v7x
topology: tpu7x:2x2x1
jax: 0.10.0
libtpu: 0.0.40
codegen_flags: <defaults>
</compile_context>

<pallas_src>
import functools

import jax
import jax.numpy as jnp
from jax import lax
from jax.experimental import pallas as pl
from jax.experimental.pallas import tpu as pltpu


def _sepconv_fold_kernel(x_ref, m_ref, o_ref, xpad_ref, *,
                         KH, H, HO, WCIN, PAD, B_TILE):
    """One batch tile per grid step.

    x_ref   : (B_TILE, H, W*CIN)       unpadded input; (W, C) packed on lanes
    m_ref   : (KH, W*CIN, WO*COUT)     folded depthwise+pointwise weight
    o_ref   : (B_TILE, HO, WO*COUT)    lane-dense output (WO*COUT == 128 here)
    xpad_ref: (B_TILE, Hp, W*CIN)      VMEM scratch, vertical zero-pad only
    """
    # Vertical halo only (horizontal padding is zero rows of m_ref).  Re-zeroed
    # every step on purpose: gating on program_id==0 is unsafe under "parallel"
    # grid semantics on v7x (each core has its own scratch).
    if PAD > 0:
        zhalo = jnp.zeros((B_TILE, PAD, WCIN), xpad_ref.dtype)
        xpad_ref[:, :PAD, :] = zhalo
        xpad_ref[:, PAD + H:, :] = zhalo
    xpad_ref[:, PAD:PAD + H, :] = x_ref[...].astype(xpad_ref.dtype)

    nout = o_ref.shape[-1]
    # Batch elements stacked along sublanes -> MXU LHS has B_TILE*HO rows.
    acc = jnp.zeros((B_TILE * HO, nout), jnp.float32)
    for kh in range(KH):                       # KH static MXU pushes, f32 acc
        lhs = xpad_ref[:, kh:kh + HO, :].reshape(B_TILE * HO, WCIN)
        acc = acc + jnp.dot(lhs, m_ref[kh], preferred_element_type=jnp.float32)
    o_ref[...] = acc.reshape(B_TILE, HO, nout).astype(o_ref.dtype)


def fold_separable_weights(dw_weight, pw_weight, *, width, padding=1):
    """Fold depthwise (CIN,1,KH,KW) and pointwise (COUT,CIN,1,1) PyTorch weights
    into the per-kh matmul weight M of shape (KH, W*CIN, WO*COUT).

    Done ONCE at module init (hoisted out of the per-call path).
    """
    CIN, _, KH, KW = dw_weight.shape
    COUT = pw_weight.shape[0]
    W = width
    WO = W + 2 * padding - (KW - 1)

    dw = dw_weight[:, 0, :, :].astype(jnp.float32)     # (CIN, KH, KW)
    pw = pw_weight[:, :, 0, 0].astype(jnp.float32)     # (COUT, CIN)

    w_in = jnp.arange(W)[:, None]                      # input (unpadded) column
    w_out = jnp.arange(WO)[None, :]                    # output column
    kw_idx = w_in - w_out + padding                    # which horizontal tap
    valid = (kw_idx >= 0) & (kw_idx < KW)              # off-kernel / pad -> 0
    kw_safe = jnp.clip(kw_idx, 0, KW - 1)

    taps = dw[:, :, kw_safe] * valid[None, None].astype(jnp.float32)  # (CIN,KH,W,WO)
    # M[kh, w_in*CIN + c, w*COUT + co] = taps[c, kh, w_in, w] * pw[co, c]
    m = jnp.einsum('ckiw,oc->kicwo', taps, pw)         # (KH, W, CIN, WO, COUT)
    return m.reshape(KH, W * CIN, WO * COUT)


def separable_conv2d(x_nchw, m_folded, *, kernel_size=3, padding=1,
                     out_channels=8, b_tile=None):
    """x_nchw: (N, Cin, H, W); m_folded: output of fold_separable_weights().
    Returns (N, Cout, HO, WO).  stride=1, dilation=1."""
    N, CIN, H, W = x_nchw.shape
    KH = kernel_size
    COUT = out_channels
    HO = H + 2 * padding - (KH - 1)
    WO = W + 2 * padding - (KH - 1)
    Hp = H + 2 * padding

    if b_tile is None:
        # Amortize per-step overhead but keep >=2 grid steps so both v7x
        # TensorCores get work (N=2 -> b_tile=1, grid=(2,)).
        b_tile = N // 2 if (N >= 2 and N % 2 == 0) else 1
    assert N % b_tile == 0

    # NCHW -> NHWC (required by the NCHW external contract), then a free
    # reshape packing (W, Cin) onto a single lane axis.
    x_packed = jnp.transpose(x_nchw, (0, 2, 3, 1)).reshape(N, H, W * CIN)

    kernel = functools.partial(_sepconv_fold_kernel, KH=KH, H=H, HO=HO,
                               WCIN=W * CIN, PAD=padding, B_TILE=b_tile)

    out_packed = pl.pallas_call(
        kernel,
        out_shape=jax.ShapeDtypeStruct((N, HO, WO * COUT), x_nchw.dtype),
        grid_spec=pltpu.PrefetchScalarGridSpec(
            num_scalar_prefetch=0,
            grid=(N // b_tile,),
            in_specs=[
                pl.BlockSpec((b_tile, H, W * CIN), lambda n: (n, 0, 0)),
                pl.BlockSpec((KH, W * CIN, WO * COUT), lambda n: (0, 0, 0)),
            ],
            out_specs=pl.BlockSpec((b_tile, HO, WO * COUT), lambda n: (n, 0, 0)),
            scratch_shapes=[pltpu.VMEM((b_tile, Hp, W * CIN), jnp.float32)],
        ),
        compiler_params=pltpu.CompilerParams(
            dimension_semantics=("parallel",)),
    )(x_packed, m_folded)

    # (N, HO, WO*COUT) --free reshape--> (N, HO, WO, COUT) --> NCHW (contract).
    return jnp.transpose(out_packed.reshape(N, HO, WO, COUT), (0, 3, 1, 2))


def _reference(x_nchw, dw_weight, pw_weight, *, padding=1):
    """Pure-JAX reference matching nn.Conv2d semantics (NCHW / OIHW)."""
    cin = x_nchw.shape[1]
    dw = lax.conv_general_dilated(
        x_nchw, dw_weight, window_strides=(1, 1),
        padding=[(padding, padding), (padding, padding)],
        dimension_numbers=("NCHW", "OIHW", "NCHW"),
        feature_group_count=cin)
    pw = lax.conv_general_dilated(
        dw, pw_weight, window_strides=(1, 1), padding="VALID",
        dimension_numbers=("NCHW", "OIHW", "NCHW"))
    return pw


if __name__ == "__main__":
    # Module config: in_channels=4, out_channels=8, kernel_size=3, stride=1,
    # padding=1, dilation=1, bias=False.  WO*COUT = 16*8 = 128 -> lane-dense.
    N, CIN, H, W = 2, 4, 16, 16
    COUT, K, PAD = 8, 3, 1

    key = jax.random.PRNGKey(0)
    kx, kdw, kpw = jax.random.split(key, 3)
    x = jax.random.normal(kx, (N, CIN, H, W), dtype=jnp.float32)
    dw_weight = jax.random.normal(kdw, (CIN, 1, K, K), dtype=jnp.float32) * 0.1
    pw_weight = jax.random.normal(kpw, (COUT, CIN, 1, 1), dtype=jnp.float32) * 0.1

    # Weight folding done ONCE at "module init" -- not in the per-call path.
    m_folded = jax.block_until_ready(
        fold_separable_weights(dw_weight, pw_weight, width=W, padding=PAD))

    fwd = jax.jit(functools.partial(separable_conv2d, kernel_size=K,
                                    padding=PAD, out_channels=COUT))
    out = jax.block_until_ready(fwd(x, m_folded))

    ref = _reference(x, dw_weight, pw_weight, padding=PAD)
    assert out.shape == ref.shape == (N, COUT, H, W)
    assert jnp.allclose(out, ref, atol=1e-4, rtol=1e-4)

    print("KERNEL_OK")
</pallas_src>

<mosaic_0001>
module attributes {stable_mosaic.version = 11 : i64} {
  func.func @_sepconv_fold_kernel(%arg0: i32, %arg1: memref<1x16x64xf32, #tpu.memory_space<vmem>>, %arg2: memref<3x64x128xf32, #tpu.memory_space<vmem>>, %arg3: memref<1x16x128xf32, #tpu.memory_space<vmem>>, %arg4: memref<1x18x64xf32, #tpu.memory_space<vmem>>) attributes {dimension_semantics = [#tpu.dimension_semantics<parallel>], iteration_bounds = array<i64: 2>, scalar_prefetch = 0 : i64, scratch_operands = 1 : i64, tpu.core_type = #tpu.core_type<tc>, window_params = [{transform_indices = @transform_0, window_bounds = array<i64: 1, 16, 64>}, {pipeline_mode = #tpu.pipeline_mode<synchronous>, transform_indices = @transform_1, window_bounds = array<i64: 3, 64, 128>}, {transform_indices = @transform_2, window_bounds = array<i64: 1, 16, 128>}]} {
    %cst = arith.constant 0.000000e+00 : f32
    %0 = vector.broadcast %cst : f32 to vector<1x1x64xf32>
    %c0 = arith.constant 0 : index
    %c0_0 = arith.constant 0 : index
    %c0_1 = arith.constant 0 : index
    %1 = vector.load %arg4[%c0, %c0_0, %c0_1] : memref<1x18x64xf32, #tpu.memory_space<vmem>>, vector<1x1x64xf32>
    tpu.vector_store %arg4[%c0, %c0_0, %c0_1], %0 {strides = array<i32>} : memref<1x18x64xf32, #tpu.memory_space<vmem>>, vector<1x1x64xf32>,
    %c0_2 = arith.constant 0 : index
    %c17 = arith.constant 17 : index
    %c0_3 = arith.constant 0 : index
    %2 = vector.load %arg4[%c0_2, %c17, %c0_3] : memref<1x18x64xf32, #tpu.memory_space<vmem>>, vector<1x1x64xf32>
    tpu.vector_store %arg4[%c0_2, %c17, %c0_3], %0 {strides = array<i32>} : memref<1x18x64xf32, #tpu.memory_space<vmem>>, vector<1x1x64xf32>,
    %c0_4 = arith.constant 0 : index
    %c0_5 = arith.constant 0 : index
    %c0_6 = arith.constant 0 : index
    %3 = vector.load %arg1[%c0_4, %c0_5, %c0_6] : memref<1x16x64xf32, #tpu.memory_space<vmem>>, vector<1x16x64xf32>
    %c0_7 = arith.constant 0 : index
    %c1 = arith.constant 1 : index
    %c0_8 = arith.constant 0 : index
    %4 = vector.load %arg4[%c0_7, %c1, %c0_8] : memref<1x18x64xf32, #tpu.memory_space<vmem>>, vector<1x16x64xf32>
    tpu.vector_store %arg4[%c0_7, %c1, %c0_8], %3 {strides = array<i32>} : memref<1x18x64xf32, #tpu.memory_space<vmem>>, vector<1x16x64xf32>,
    %cst_9 = arith.constant 0.000000e+00 : f32
    %5 = vector.broadcast %cst_9 : f32 to vector<16x128xf32>
    %c0_10 = arith.constant 0 : index
    %c0_11 = arith.constant 0 : index
    %c0_12 = arith.constant 0 : index
    %6 = vector.load %arg4[%c0_10, %c0_11, %c0_12] : memref<1x18x64xf32, #tpu.memory_space<vmem>>, vector<1x16x64xf32>
    %7 = vector.shape_cast %6 : vector<1x16x64xf32> to vector<16x64xf32>
    %c0_13 = arith.constant 0 : index
    %c0_14 = arith.constant 0 : index
    %c0_15 = arith.constant 0 : index
    %8 = vector.load %arg2[%c0_13, %c0_14, %c0_15] : memref<3x64x128xf32, #tpu.memory_space<vmem>>, vector<1x64x128xf32>
    %9 = vector.shape_cast %8 : vector<1x64x128xf32> to vector<64x128xf32>
    %cst_16 = arith.constant dense<0.000000e+00> : vector<16x128xf32>
    %10 = tpu.matmul %7, %9, %cst_16 {dimension_numbers = #tpu.dot_dimension_numbers<[1], [0], [0], [1], [0, 0, 1, 1], [], []>} : vector<16x64xf32>, vector<64x128xf32>, vector<16x128xf32> -> vector<16x128xf32>
    %11 = arith.addf %5, %10 : vector<16x128xf32>
    %c0_17 = arith.constant 0 : index
    %c1_18 = arith.constant 1 : index
    %c0_19 = arith.constant 0 : index
    %12 = vector.load %arg4[%c0_17, %c1_18, %c0_19] : memref<1x18x64xf32, #tpu.memory_space<vmem>>, vector<1x16x64xf32>
    %13 = vector.shape_cast %12 : vector<1x16x64xf32> to vector<16x64xf32>
    %c1_20 = arith.constant 1 : index
    %c0_21 = arith.constant 0 : index
    %c0_22 = arith.constant 0 : index
    %14 = vector.load %arg2[%c1_20, %c0_21, %c0_22] : memref<3x64x128xf32, #tpu.memory_space<vmem>>, vector<1x64x128xf32>
    %15 = vector.shape_cast %14 : vector<1x64x128xf32> to vector<64x128xf32>
    %cst_23 = arith.constant dense<0.000000e+00> : vector<16x128xf32>
    %16 = tpu.matmul %13, %15, %cst_23 {dimension_numbers = #tpu.dot_dimension_numbers<[1], [0], [0], [1], [0, 0, 1, 1], [], []>} : vector<16x64xf32>, vector<64x128xf32>, vector<16x128xf32> -> vector<16x128xf32>
    %17 = arith.addf %11, %16 : vector<16x128xf32>
    %c0_24 = arith.constant 0 : index
    %c2 = arith.constant 2 : index
    %c0_25 = arith.constant 0 : index
    %18 = vector.load %arg4[%c0_24, %c2, %c0_25] : memref<1x18x64xf32, #tpu.memory_space<vmem>>, vector<1x16x64xf32>
    %19 = vector.shape_cast %18 : vector<1x16x64xf32> to vector<16x64xf32>
    %c2_26 = arith.constant 2 : index
    %c0_27 = arith.constant 0 : index
    %c0_28 = arith.constant 0 : index
    %20 = vector.load %arg2[%c2_26, %c0_27, %c0_28] : memref<3x64x128xf32, #tpu.memory_space<vmem>>, vector<1x64x128xf32>
    %21 = vector.shape_cast %20 : vector<1x64x128xf32> to vector<64x128xf32>
    %cst_29 = arith.constant dense<0.000000e+00> : vector<16x128xf32>
    %22 = tpu.matmul %19, %21, %cst_29 {dimension_numbers = #tpu.dot_dimension_numbers<[1], [0], [0], [1], [0, 0, 1, 1], [], []>} : vector<16x64xf32>, vector<64x128xf32>, vector<16x128xf32> -> vector<16x128xf32>
    %23 = arith.addf %17, %22 : vector<16x128xf32>
    %24 = vector.shape_cast %23 : vector<16x128xf32> to vector<1x16x128xf32>
    %c0_30 = arith.constant 0 : index
    %c0_31 = arith.constant 0 : index
    %c0_32 = arith.constant 0 : index
    %25 = vector.load %arg3[%c0_30, %c0_31, %c0_32] : memref<1x16x128xf32, #tpu.memory_space<vmem>>, vector<1x16x128xf32>
    tpu.vector_store %arg3[%c0_30, %c0_31, %c0_32], %24 {strides = array<i32>} : memref<1x16x128xf32, #tpu.memory_space<vmem>>, vector<1x16x128xf32>,
    return
  }
  func.func @transform_0(%arg0: i32) -> (i32, i32, i32) {
    %c0_i32 = arith.constant 0 : i32
    %c0_i32_0 = arith.constant 0 : i32
    %c0_i32_1 = arith.constant 0 : i32
    return %arg0, %c0_i32, %c0_i32_0 : i32, i32, i32
  }
  func.func @transform_1(%arg0: i32) -> (i32, i32, i32) {
    %c0_i32 = arith.constant 0 : i32
    %c0_i32_0 = arith.constant 0 : i32
    %c0_i32_1 = arith.constant 0 : i32
    %c0_i32_2 = arith.constant 0 : i32
    return %c0_i32, %c0_i32_0, %c0_i32_1 : i32, i32, i32
  }
  func.func @transform_2(%arg0: i32) -> (i32, i32, i32) {
    %c0_i32 = arith.constant 0 : i32
    %c0_i32_0 = arith.constant 0 : i32
    %c0_i32_1 = arith.constant 0 : i32
    return %arg0, %c0_i32, %c0_i32_0 : i32, i32, i32
  }
}

</mosaic_0001>

<bundles_post_ra>
// kernel: separable_conv2d.1
= control target key start
LH: loop header
LB: loop body
LE: loop exit
PB: predicated region body
PF: predicated region fallthrough
CT: control target
= control target key end

     0   :  { %s693_s9 = smov 0   ;;  %s797_s0 = inlined_call_operand.vmem [shape: f32[2,16,64], index: 0, kind: input, shape index: {}]   ;;  %s798_s1 = inlined_call_operand.vmem [shape: f32[3,64,128], index: 1, kind: input, shape index: {}]   ;;  %s799_s2 = inlined_call_operand.vmem [shape: f32[2,16,128], index: 2, kind: output, shape index: {}]  }
   0x1 LB: > { %s486_s10 = sadd.s32 4294967295, %s675_s9   ;;  %p490_p0 = scmp.ge.s32.totalorder %s675_s9, 1  ;;  %s675_s9 = sphi %s693_s9, %s12_s9  }
   0x2   : > { %p112_p1 = scmp.lt.s32.totalorder %s675_s9, 3 }
   0x4   : > { %p113_p2 = pnand %p490_p0, %p112_p1 }
   0x5   : > { %v154_v0 = vld [vmem:[%s798_s1] sm:$0xff] (!%p113_p2)  ;;  %v155_v1 = vld [vmem:[%s798_s1 + $0x8] sm:$0xff] (!%p113_p2)  ;;  %v156_v2 = vld [vmem:[%s798_s1 + $0x10] sm:$0xff] (!%p113_p2)  ;;  %p134_p3 = scmp.lt.s32.totalorder (!%p113_p2), %s486_s10, 1  ;;  %vm144_vm0 = vcmask (!%p113_p2), 516096   ;;  %v677_v5 = vmov (!%p113_p2), 0.0  }
   0x6   : > { %116 = sbr.rel (%p113_p2) target bundleno = 258 (0x102), region = 28  ;;  %v624_v3 = vpack.c.bf16 (!%p113_p2), %v155_v1, %v154_v0  ;;  %v157_v4 = vld [vmem:[%s798_s1 + $0x18] sm:$0xff] (!%p113_p2)  ;;  %145 = vst.msk [vmem:[#allocation2] sm:$0x1] (!%p113_p2), %vm144_vm0, %v677_v5  ;;  %146 = vst.msk [vmem:[#allocation2 + $0x11] sm:$0x1] (!%p113_p2), %vm144_vm0, %v677_v5 }
   0x7   : > { %v628_v6 = vpack.c.bf16 (!%p113_p2), %v157_v4, %v156_v2  ;;  %v158_v7 = vld [vmem:[%s798_s1 + $0x20] sm:$0xff] (!%p113_p2)  ;;  %v159_v8 = vld [vmem:[%s798_s1 + $0x28] sm:$0xff] (!%p113_p2)  ;;  %vm149_vm1 = vcmask (!%p113_p2), 523264   ;;  %v497_v12 = vld [vmem:[%s798_s1 + $0x50] sm:$0xff] (!%p113_p2) }
   0x8   : > { %v495_v9 = vld [vmem:[%s798_s1 + $0x40] sm:$0xff] (!%p113_p2)  ;;  %625 = vmatprep.subr.bf16.mxu0 (!%p113_p2), %v624_v3  ;;  %v496_v10 = vld [vmem:[%s798_s1 + $0x48] sm:$0xff] (!%p113_p2)  ;;  %v498_v13 = vld [vmem:[%s798_s1 + $0x58] sm:$0xff] (!%p113_p2)  ;;  %v632_v14 = vpack.c.bf16 (!%p113_p2), %v159_v8, %v158_v7 }
   0x9   : > { %627 = vmatpush3.bf16.msra.mxu0 (!%p113_p2), %v624_v3  ;;  %v608_v11 = vpack.c.bf16 (!%p113_p2), %v496_v10, %v495_v9  ;;  %v160_v15 = vld [vmem:[%s798_s1 + $0x30] sm:$0xff] (!%p113_p2)  ;;  %v612_v16 = vpack.c.bf16 (!%p113_p2), %v498_v13, %v497_v12  ;;  %v499_v17 = vld [vmem:[%s798_s1 + $0x60] sm:$0xff] (!%p113_p2)  ;;  %v500_v18 = vld [vmem:[%s798_s1 + $0x68] sm:$0xff] (!%p113_p2) }
   0xa   : > { %629 = vmatprep.subr.bf16.mxu0 (!%p113_p2), %v628_v6  ;;  %v161_v19 = vld [vmem:[%s798_s1 + $0x38] sm:$0xff] (!%p113_p2)  ;;  %v616_v22 = vpack.c.bf16 (!%p113_p2), %v500_v18, %v499_v17  ;;  %v501_v24 = vld [vmem:[%s798_s1 + $0x70] sm:$0xff] (!%p113_p2)  ;;  %v507_v26 = vld [vmem:[%s798_s1 + $0x80] sm:$0xff] (!%p113_p2) }
   0xb   : > { %609 = vmatprep.subr.bf16.mxu1 (!%p113_p2), %v608_v11  ;;  %v636_v23 = vpack.c.bf16 (!%p113_p2), %v161_v19, %v160_v15  ;;  %v502_v25 = vld [vmem:[%s798_s1 + $0x78] sm:$0xff] (!%p113_p2)  ;;  %v508_v27 = vld [vmem:[%s798_s1 + $0x88] sm:$0xff] (!%p113_p2)  ;;  %v509_v30 = vld [vmem:[%s798_s1 + $0x90] sm:$0xff] (!%p113_p2) }
   0xc   : > { %611 = vmatpush3.bf16.msra.mxu1 (!%p113_p2), %v608_v11  ;;  %v620_v28 = vpack.c.bf16 (!%p113_p2), %v502_v25, %v501_v24  ;;  %v640_v29 = vpack.c.bf16 (!%p113_p2), %v508_v27, %v507_v26  ;;  %v510_v32 = vld [vmem:[%s798_s1 + $0x98] sm:$0xff] (!%p113_p2)  ;;  %v511_v37 = vld [vmem:[%s798_s1 + $0xa0] sm:$0xff] (!%p113_p2)  ;;  %v512_v38 = vld [vmem:[%s798_s1 + $0xa8] sm:$0xff] (!%p113_p2) }
   0xd   : > { %s801_s10 = smov (!%p134_p3, %s486_s10), 1  ;;  %631 = vmatpush3.bf16.msra.mxu0 %v628_v6  ;;  %613 = vmatprep.subr.bf16.mxu1 %v612_v16  ;;  %v644_v35 = vpack.c.bf16 %v510_v32, %v509_v30  ;;  %v648_v40 = vpack.c.bf16 %v512_v38, %v511_v37  ;;  %v513_v41 = vld [vmem:[%s798_s1 + $0xb0] sm:$0xff]  ;;  %v514_v42 = vld [vmem:[%s798_s1 + $0xb8] sm:$0xff] }
   0xe   : > { %s519_s27 = sshll.u32 %s801_s10, 4  ;;  %633 = vmatprep.subr.bf16.mxu0 %v632_v14  ;;  %v652_v43 = vpack.c.bf16 %v514_v42, %v513_v41 }
   0xf   : > { %s138_s8 = scalar_lea.vmem %s797_s0, %s519_s27  ;;  %s143_s14 = scalar_lea.vmem %s799_s2, %s519_s27 }
  0x10   : > { %v147_v20 = vld [vmem:[%s138_s8] sm:$0xff]  ;;  %v148_v21 = vld [vmem:[%s138_s8 + $0x8] sm:$0xff]  ;;  %615 = vmatpush3.bf16.msra.mxu1 %v612_v16 }
  0x11   : > { %150 = vst.msk [vmem:[#allocation2 + $0x1] sm:$0xff] %vm149_vm1, %v147_v20  ;;  %151 = vst.msk [vmem:[#allocation2 + $0x9] sm:$0xff] %vm149_vm1, %v148_v21  ;;  %635 = vmatpush3.bf16.msra.mxu0 %v632_v14  ;;  %617 = vmatprep.subr.bf16.mxu1 %v616_v22 }
  0x12   : > { %637 = vmatprep.subr.bf16.mxu0 %v636_v23 }
  0x14   : > { %619 = vmatpush3.bf16.msra.mxu1 %v616_v22 }
  0x15   : > { %639 = vmatpush3.bf16.msra.mxu0 %v636_v23  ;;  %621 = vmatprep.subr.bf16.mxu1 %v620_v28 }
  0x16   : > { %641 = vmatprep.subr.bf16.mxu0 %v640_v29 }
  0x18   : > { %v152_v31 = vld [vmem:[#allocation2] sm:$0xff]  ;;  %v153_v34 = vld [vmem:[#allocation2 + $0x8] sm:$0xff]  ;;  %623 = vmatpush3.bf16.msra.mxu1 %v620_v28 }
  0x19   : > { %v162_v33 = vld [vmem:[#allocation2 + $0x1] sm:$0xff]  ;;  %586 = vmatprep.mubr.msk.f32.mxu0 %vm149_vm1, %v152_v31  ;;  %v163_v39 = vld [vmem:[#allocation2 + $0x9] sm:$0xff] }
  0x1a   : > { %567 = vmatprep.mubr.msk.f32.mxu1 %vm149_vm1, %v162_v33  ;;  %v335_v36 = vld [vmem:[#allocation2 + $0x2] sm:$0xff]  ;;  %587 = vmatmul.mubr.msk.f32.vlgmr.msra.gmra.mrb[0].mxu0 %vm149_vm1, %v153_v34  ;;  %v336_v44 = vld [vmem:[#allocation2 + $0xa] sm:$0xff] }
  0x1b   : > { %643 = vmatpush3.bf16.msra.mxu0 %v640_v29  ;;  %605 = vmatprep.mubr.msk.f32.mxu0 %vm149_vm1, %v335_v36 }
  0x1c   : > { %645 = vmatprep.subr.bf16.mxu0 %v644_v35  ;;  %568 = vmatmul.mubr.msk.f32.vlgmr.msra.gmra.mrb[0].mxu1 %vm149_vm1, %v163_v39 }
  0x1f   : > { %647 = vmatpush3.bf16.msra.mxu0 %v644_v35 }
  0x20   : > { %649 = vmatprep.subr.bf16.mxu0 %v648_v40 }
  0x23   : > { %651 = vmatpush3.bf16.msra.mxu0 %v648_v40 }
  0x24   : > { %653 = vmatprep.subr.bf16.mxu0 %v652_v43 }
  0x27   : > { %655 = vmatpush3.bf16.msra.mxu0 %v652_v43 }
  0x2a   : > { %606 = vmatmul.mubr.msk.f32.vlgmr.msra.gmra.mrb[0].mxu0 %vm149_vm1, %v336_v44 }
  0xef   : > { %v569_v45 = vpop.f32.mrb[0].mxu1 }
  0xf0   : > { %v245_v46 = vpop.f32.mrb[1].mxu1 }
  0xfd   : > { %v607_v47 = vpop.f32.mrb[0].mxu0 }
  0xfe   : > { %v656_v48 = vadd.f32 %v607_v47, %v569_v45  ;;  %v418_v49 = vpop.f32.mrb[1].mxu0 }
  0xff   : > { %v657_v50 = vadd.f32 %v418_v49, %v245_v46 }
 0x100   : > { %430 = vst [vmem:[%s143_s14 + $0x8] sm:$0xff] %v656_v48 }
 0x101   : > { %429 = vst [vmem:[%s143_s14] sm:$0xff] %v657_v50 }
 0x102 PF: > { %s12_s9 = sadd.s32 1, %s675_s9  }
 0x103   : > { %p9_p4 = scmp.ge.s32.totalorder %s12_s9, 4  }
 0x105   :  { %11 = sbr.rel (!%p9_p4) target bundleno = 1 (0x1), region = 60 }

</bundles_post_ra>
